<compile_context>
chip_gen: v6e
topology: v6e:2x2x1
jax: 0.10.0
libtpu: 0.0.40
codegen_flags: <defaults>
</compile_context>

<pallas_src>
import functools

import jax
import jax.numpy as jnp
from jax.experimental import pallas as pl
from jax.experimental.pallas import tpu as pltpu


def actor_kernel(x_ref, w1_ref, b1_ref, w2_ref, b2_ref, wh_ref, bh_ref,
                 out_ref, *, n_actions):
    # x tile arrives in f32; cast to bf16 only at the MXU inputs.
    x = x_ref[...]

    # fc1 + relu  (bf16 MXU, f32 accumulate, f32 bias/ReLU)
    h1 = jnp.dot(x.astype(jnp.bfloat16), w1_ref[...],
                 preferred_element_type=jnp.float32) + b1_ref[...]
    h1 = jnp.maximum(h1, 0.0)

    # fc2 + relu
    h2 = jnp.dot(h1.astype(jnp.bfloat16), w2_ref[...],
                 preferred_element_type=jnp.float32) + b2_ref[...]
    h2 = jnp.maximum(h2, 0.0)

    # Fused head: columns [0:n_actions] = mu, column [n_actions] = sigma,
    # remaining (zero-weight) columns pad up to the 128-lane slab.
    y = jnp.dot(h2.astype(jnp.bfloat16), wh_ref[...],
                preferred_element_type=jnp.float32) + bh_ref[...]

    lane = jax.lax.broadcasted_iota(jnp.int32, y.shape, dimension=1)
    is_sigma = lane == n_actions
    out_ref[...] = jnp.where(is_sigma, jnp.clip(y, 1e-6, 1.0), y)


def _choose_batch_tile(B, tb_max=2048):
    """Pick a batch tile TB (multiple of 8) that minimizes padding while
    keeping >= 2 grid steps (megacore sharding on v7x + DMA pipelining) and
    preferring an even number of steps."""
    max_steps = pl.cdiv(B, 8)                       # can't split below 8 rows
    target = max(2, 2 * pl.cdiv(B, 2 * tb_max))     # >=2, even, honors tb_max
    n_steps = max(1, min(target, max_steps))
    TB = pl.cdiv(pl.cdiv(B, n_steps), 8) * 8
    B_pad = pl.cdiv(B, TB) * TB
    return TB, B_pad


def actor_forward(x, params, *, tb_max=2048, return_packed=False):
    """x: (B, input_dims) float32.

    Returns (mu (B, n_actions), sigma (B, 1)), or, if return_packed=True, the
    raw (B_pad, 128) f32 slab with layout [mu | sigma | zero-padding] (avoids
    two wrapper-side slice passes over the slab for downstream consumers).
    """
    B, in_dims = x.shape
    n_actions = int(params["n_actions"])

    # Kernel weights: bf16 for the MXU; biases stay f32.
    w1 = params["w1"].astype(jnp.bfloat16)
    w2 = params["w2"].astype(jnp.bfloat16)
    wh = params["w_head"].astype(jnp.bfloat16)
    b1, b2, bh = params["b1"], params["b2"], params["b_head"]

    fc1 = w1.shape[1]
    fc2 = w2.shape[1]
    head_w = wh.shape[1]  # multiple of 128

    TB, B_pad = _choose_batch_tile(B, tb_max)
    if B_pad != B:
        x = jnp.pad(x, ((0, B_pad - B), (0, 0)))
    grid = (B_pad // TB,)

    cost = pl.CostEstimate(
        flops=2 * B_pad * (in_dims * fc1 + fc1 * fc2 + fc2 * head_w),
        transcendentals=0,
        bytes_accessed=(B_pad * in_dims * 4                               # x
                        + (in_dims * fc1 + fc1 * fc2 + fc2 * head_w) * 2  # bf16 W
                        + (fc1 + fc2 + head_w) * 4                        # biases
                        + B_pad * head_w * 4))                            # out

    kernel = functools.partial(actor_kernel, n_actions=n_actions)
    const = lambda i: (0, 0)  # weights/biases: same block every grid step

    def build(single_buffer_weights):
        if single_buffer_weights:
            # Constant-index weights: no point double-buffering them.
            wspec = lambda shape: pl.BlockSpec(shape, const,
                                               pipeline_mode=pl.Buffered(1))
        else:
            wspec = lambda shape: pl.BlockSpec(shape, const)
        return pl.pallas_call(
            kernel,
            out_shape=jax.ShapeDtypeStruct((B_pad, head_w), jnp.float32),
            grid=grid,
            in_specs=[
                pl.BlockSpec((TB, in_dims), lambda i: (i, 0)),   # x tile
                wspec((in_dims, fc1)),                           # w1 (bf16)
                wspec((1, fc1)),                                 # b1 (f32)
                wspec((fc1, fc2)),                               # w2 (bf16)
                wspec((1, fc2)),                                 # b2 (f32)
                wspec((fc2, head_w)),                            # fused head W
                wspec((1, head_w)),                              # fused head b
            ],
            out_specs=pl.BlockSpec((TB, head_w), lambda i: (i, 0)),
            compiler_params=pltpu.CompilerParams(
                dimension_semantics=("parallel",)),
            cost_estimate=cost,
        )

    try:
        out = build(True)(x, w1, b1, w2, b2, wh, bh)
    except Exception:
        # Fallback if this JAX build rejects pipeline_mode on BlockSpec.
        out = build(False)(x, w1, b1, w2, b2, wh, bh)

    if return_packed:
        return out
    mu = out[:B, :n_actions]
    sigma = out[:B, n_actions:n_actions + 1]
    return mu, sigma


def init_params(key, input_dims, fc1_dims=256, fc2_dims=256, n_actions=2):
    """PyTorch-style nn.Linear init (U[-1/sqrt(fan_in), 1/sqrt(fan_in)]).
    Kernel weights stored (in, out) in bf16; mu/sigma heads packed into one
    128-lane-wide head.  f32 originals kept for reference math."""
    ks = jax.random.split(key, 8)

    def lin(kw, kb, fan_in, fan_out):
        bound = 1.0 / jnp.sqrt(float(fan_in))
        w = jax.random.uniform(kw, (fan_in, fan_out), jnp.float32, -bound, bound)
        b = jax.random.uniform(kb, (1, fan_out), jnp.float32, -bound, bound)
        return w, b

    w1, b1 = lin(ks[0], ks[1], input_dims, fc1_dims)
    w2, b2 = lin(ks[2], ks[3], fc1_dims, fc2_dims)
    wmu, bmu = lin(ks[4], ks[5], fc2_dims, n_actions)
    wsig, bsig = lin(ks[6], ks[7], fc2_dims, 1)

    # Pack heads: [mu columns | sigma column | zero padding] -> width mult of 128.
    head_cols = n_actions + 1
    head_w = max(128, pl.cdiv(head_cols, 128) * 128)
    w_head = jnp.zeros((fc2_dims, head_w), jnp.float32)
    w_head = w_head.at[:, :n_actions].set(wmu)
    w_head = w_head.at[:, n_actions:n_actions + 1].set(wsig)
    b_head = jnp.zeros((1, head_w), jnp.float32)
    b_head = b_head.at[:, :n_actions].set(bmu)
    b_head = b_head.at[:, n_actions:n_actions + 1].set(bsig)

    return {
        # Kernel-facing parameters (weights bf16, biases f32).
        "w1": w1.astype(jnp.bfloat16), "b1": b1,
        "w2": w2.astype(jnp.bfloat16), "b2": b2,
        "w_head": w_head.astype(jnp.bfloat16), "b_head": b_head,
        # f32 originals for reference / training-side use.
        "w1_f32": w1, "w2_f32": w2,
        "wmu": wmu, "bmu": bmu, "wsig": wsig, "bsig": bsig,
        "n_actions": n_actions,
    }


if __name__ == "__main__":
    key = jax.random.PRNGKey(0)
    k_param, k_x = jax.random.split(key)

    B = 64           # batch (gives a 2-step grid -> exercises pipelining)
    input_dims = 8   # state dimension
    fc1_dims = 256
    fc2_dims = 256
    n_actions = 2

    params = init_params(k_param, input_dims, fc1_dims, fc2_dims, n_actions)
    x = jax.random.normal(k_x, (B, input_dims), jnp.float32)

    mu, sigma = actor_forward(x, params)
    jax.block_until_ready((mu, sigma))
    assert mu.shape == (B, n_actions) and sigma.shape == (B, 1)

    # Reference 1: same bf16-weight / f32-accumulate math in plain JAX
    # (tight tolerance -> validates the kernel itself).
    h1q = jnp.maximum(jnp.dot(x.astype(jnp.bfloat16), params["w1"],
                              preferred_element_type=jnp.float32) + params["b1"], 0.0)
    h2q = jnp.maximum(jnp.dot(h1q.astype(jnp.bfloat16), params["w2"],
                              preferred_element_type=jnp.float32) + params["b2"], 0.0)
    yq = jnp.dot(h2q.astype(jnp.bfloat16), params["w_head"],
                 preferred_element_type=jnp.float32) + params["b_head"]
    mu_q = yq[:, :n_actions]
    sig_q = jnp.clip(yq[:, n_actions:n_actions + 1], 1e-6, 1.0)
    assert jnp.allclose(mu, mu_q, atol=1e-3, rtol=1e-3)
    assert jnp.allclose(sigma, sig_q, atol=1e-3, rtol=1e-3)

    # Reference 2: full-f32 math (same as the PyTorch forward); loose tolerance
    # accounts for bf16 quantization of the 256-deep reductions.
    h1 = jnp.maximum(x @ params["w1_f32"] + params["b1"], 0.0)
    h2 = jnp.maximum(h1 @ params["w2_f32"] + params["b2"], 0.0)
    mu_ref = h2 @ params["wmu"] + params["bmu"]
    sig_ref = jnp.clip(h2 @ params["wsig"] + params["bsig"], 1e-6, 1.0)
    assert jnp.allclose(mu, mu_ref, atol=5e-2, rtol=5e-2)
    assert jnp.allclose(sigma, sig_ref, atol=5e-2, rtol=5e-2)

    # TODO(synk): sample_normal (rsample/tanh/log_prob) is a separate stochastic
    # method of the module, not part of forward(); only forward() is fused here.
    print("KERNEL_OK")
</pallas_src>

<mosaic_0001>
module attributes {stable_mosaic.version = 11 : i64} {
  func.func @actor_kernel(%arg0: i32, %arg1: memref<32x8xf32, #tpu.memory_space<vmem>>, %arg2: memref<8x256xbf16, #tpu.memory_space<vmem>>, %arg3: memref<1x256xf32, #tpu.memory_space<vmem>>, %arg4: memref<256x256xbf16, #tpu.memory_space<vmem>>, %arg5: memref<1x256xf32, #tpu.memory_space<vmem>>, %arg6: memref<256x128xbf16, #tpu.memory_space<vmem>>, %arg7: memref<1x128xf32, #tpu.memory_space<vmem>>, %arg8: memref<32x128xf32, #tpu.memory_space<vmem>>) attributes {dimension_semantics = [#tpu.dimension_semantics<parallel>], iteration_bounds = array<i64: 2>, scalar_prefetch = 0 : i64, scratch_operands = 0 : i64, tpu.core_type = #tpu.core_type<tc>, window_params = [{transform_indices = @transform_0, window_bounds = array<i64: 32, 8>}, {pipeline_mode = #tpu.pipeline_mode<synchronous>, transform_indices = @transform_1, window_bounds = array<i64: 8, 256>}, {pipeline_mode = #tpu.pipeline_mode<synchronous>, transform_indices = @transform_2, window_bounds = array<i64: 1, 256>}, {pipeline_mode = #tpu.pipeline_mode<synchronous>, transform_indices = @transform_3, window_bounds = array<i64: 256, 256>}, {pipeline_mode = #tpu.pipeline_mode<synchronous>, transform_indices = @transform_4, window_bounds = array<i64: 1, 256>}, {pipeline_mode = #tpu.pipeline_mode<synchronous>, transform_indices = @transform_5, window_bounds = array<i64: 256, 128>}, {pipeline_mode = #tpu.pipeline_mode<synchronous>, transform_indices = @transform_6, window_bounds = array<i64: 1, 128>}, {transform_indices = @transform_7, window_bounds = array<i64: 32, 128>}]} {
    %c0 = arith.constant 0 : index
    %c0_0 = arith.constant 0 : index
    %0 = vector.load %arg1[%c0, %c0_0] : memref<32x8xf32, #tpu.memory_space<vmem>>, vector<32x8xf32>
    %1 = arith.truncf %0 : vector<32x8xf32> to vector<32x8xbf16>
    %c0_1 = arith.constant 0 : index
    %c0_2 = arith.constant 0 : index
    %2 = vector.load %arg2[%c0_1, %c0_2] : memref<8x256xbf16, #tpu.memory_space<vmem>>, vector<8x256xbf16>
    %cst = arith.constant dense<0.000000e+00> : vector<32x256xf32>
    %3 = tpu.matmul %1, %2, %cst {dimension_numbers = #tpu.dot_dimension_numbers<[1], [0], [0], [1], [0, 0, 1, 1], [], []>} : vector<32x8xbf16>, vector<8x256xbf16>, vector<32x256xf32> -> vector<32x256xf32>
    %c0_3 = arith.constant 0 : index
    %c0_4 = arith.constant 0 : index
    %4 = vector.load %arg3[%c0_3, %c0_4] : memref<1x256xf32, #tpu.memory_space<vmem>>, vector<1x256xf32>
    %5 = vector.broadcast %4 : vector<1x256xf32> to vector<32x256xf32>
    %6 = arith.addf %3, %5 : vector<32x256xf32>
    %cst_5 = arith.constant 0.000000e+00 : f32
    %7 = vector.broadcast %cst_5 : f32 to vector<32x256xf32>
    %8 = arith.maximumf %6, %7 : vector<32x256xf32>
    %9 = arith.truncf %8 : vector<32x256xf32> to vector<32x256xbf16>
    %c0_6 = arith.constant 0 : index
    %c0_7 = arith.constant 0 : index
    %10 = vector.load %arg4[%c0_6, %c0_7] : memref<256x256xbf16, #tpu.memory_space<vmem>>, vector<256x256xbf16>
    %cst_8 = arith.constant dense<0.000000e+00> : vector<32x256xf32>
    %11 = tpu.matmul %9, %10, %cst_8 {dimension_numbers = #tpu.dot_dimension_numbers<[1], [0], [0], [1], [0, 0, 1, 1], [], []>} : vector<32x256xbf16>, vector<256x256xbf16>, vector<32x256xf32> -> vector<32x256xf32>
    %c0_9 = arith.constant 0 : index
    %c0_10 = arith.constant 0 : index
    %12 = vector.load %arg5[%c0_9, %c0_10] : memref<1x256xf32, #tpu.memory_space<vmem>>, vector<1x256xf32>
    %13 = vector.broadcast %12 : vector<1x256xf32> to vector<32x256xf32>
    %14 = arith.addf %11, %13 : vector<32x256xf32>
    %cst_11 = arith.constant 0.000000e+00 : f32
    %15 = vector.broadcast %cst_11 : f32 to vector<32x256xf32>
    %16 = arith.maximumf %14, %15 : vector<32x256xf32>
    %17 = arith.truncf %16 : vector<32x256xf32> to vector<32x256xbf16>
    %c0_12 = arith.constant 0 : index
    %c0_13 = arith.constant 0 : index
    %18 = vector.load %arg6[%c0_12, %c0_13] : memref<256x128xbf16, #tpu.memory_space<vmem>>, vector<256x128xbf16>
    %cst_14 = arith.constant dense<0.000000e+00> : vector<32x128xf32>
    %19 = tpu.matmul %17, %18, %cst_14 {dimension_numbers = #tpu.dot_dimension_numbers<[1], [0], [0], [1], [0, 0, 1, 1], [], []>} : vector<32x256xbf16>, vector<256x128xbf16>, vector<32x128xf32> -> vector<32x128xf32>
    %c0_15 = arith.constant 0 : index
    %c0_16 = arith.constant 0 : index
    %20 = vector.load %arg7[%c0_15, %c0_16] : memref<1x128xf32, #tpu.memory_space<vmem>>, vector<1x128xf32>
    %21 = vector.broadcast %20 : vector<1x128xf32> to vector<32x128xf32>
    %22 = arith.addf %19, %21 : vector<32x128xf32>
    %23 = tpu.iota {dimensions = array<i32: 1>} : vector<32x128xi32>
    %c2_i32 = arith.constant 2 : i32
    %24 = vector.broadcast %c2_i32 : i32 to vector<32x128xi32>
    %25 = arith.cmpi eq, %23, %24 : vector<32x128xi32>
    %cst_17 = arith.constant 9.99999997E-7 : f32
    %cst_18 = arith.constant 1.000000e+00 : f32
    %26 = vector.broadcast %cst_17 : f32 to vector<32x128xf32>
    %27 = arith.maximumf %26, %22 : vector<32x128xf32>
    %28 = vector.broadcast %cst_18 : f32 to vector<32x128xf32>
    %29 = arith.minimumf %28, %27 : vector<32x128xf32>
    %30 = arith.select %25, %29, %22 : vector<32x128xi1>, vector<32x128xf32>
    %c0_19 = arith.constant 0 : index
    %c0_20 = arith.constant 0 : index
    %31 = vector.load %arg8[%c0_19, %c0_20] : memref<32x128xf32, #tpu.memory_space<vmem>>, vector<32x128xf32>
    tpu.vector_store %arg8[%c0_19, %c0_20], %30 {strides = array<i32>} : memref<32x128xf32, #tpu.memory_space<vmem>>, vector<32x128xf32>,
    return
  }
  func.func @transform_0(%arg0: i32) -> (i32, i32) {
    %c0_i32 = arith.constant 0 : i32
    %c0_i32_0 = arith.constant 0 : i32
    return %arg0, %c0_i32 : i32, i32
  }
  func.func @transform_1(%arg0: i32) -> (i32, i32) {
    %c0_i32 = arith.constant 0 : i32
    %c0_i32_0 = arith.constant 0 : i32
    %c0_i32_1 = arith.constant 0 : i32
    return %c0_i32, %c0_i32_0 : i32, i32
  }
  func.func @transform_2(%arg0: i32) -> (i32, i32) {
    %c0_i32 = arith.constant 0 : i32
    %c0_i32_0 = arith.constant 0 : i32
    %c0_i32_1 = arith.constant 0 : i32
    return %c0_i32, %c0_i32_0 : i32, i32
  }
  func.func @transform_3(%arg0: i32) -> (i32, i32) {
    %c0_i32 = arith.constant 0 : i32
    %c0_i32_0 = arith.constant 0 : i32
    %c0_i32_1 = arith.constant 0 : i32
    return %c0_i32, %c0_i32_0 : i32, i32
  }
  func.func @transform_4(%arg0: i32) -> (i32, i32) {
    %c0_i32 = arith.constant 0 : i32
    %c0_i32_0 = arith.constant 0 : i32
    %c0_i32_1 = arith.constant 0 : i32
    return %c0_i32, %c0_i32_0 : i32, i32
  }
  func.func @transform_5(%arg0: i32) -> (i32, i32) {
    %c0_i32 = arith.constant 0 : i32
    %c0_i32_0 = arith.constant 0 : i32
    %c0_i32_1 = arith.constant 0 : i32
    return %c0_i32, %c0_i32_0 : i32, i32
  }
  func.func @transform_6(%arg0: i32) -> (i32, i32) {
    %c0_i32 = arith.constant 0 : i32
    %c0_i32_0 = arith.constant 0 : i32
    %c0_i32_1 = arith.constant 0 : i32
    return %c0_i32, %c0_i32_0 : i32, i32
  }
  func.func @transform_7(%arg0: i32) -> (i32, i32) {
    %c0_i32 = arith.constant 0 : i32
    %c0_i32_0 = arith.constant 0 : i32
    return %arg0, %c0_i32 : i32, i32
  }
}

module attributes {stable_mosaic.version = 11 : i64} {
  func.func @actor_kernel(%arg0: i32, %arg1: memref<32x8xf32, #tpu.memory_space<vmem>>, %arg2: memref<8x256xbf16, #tpu.memory_space<vmem>>, %arg3: memref<1x256xf32, #tpu.memory_space<vmem>>, %arg4: memref<256x256xbf16, #tpu.memory_space<vmem>>, %arg5: memref<1x256xf32, #tpu.memory_space<vmem>>, %arg6: memref<256x128xbf16, #tpu.memory_space<vmem>>, %arg7: memref<1x128xf32, #tpu.memory_space<vmem>>, %arg8: memref<32x128xf32, #tpu.memory_space<vmem>>) attributes {dimension_semantics = [#tpu.dimension_semantics<parallel>], iteration_bounds = array<i64: 2>, scalar_prefetch = 0 : i64, scratch_operands = 0 : i64, tpu.core_type = #tpu.core_type<tc>, window_params = [{transform_indices = @transform_0, window_bounds = array<i64: 32, 8>}, {pipeline_mode = #tpu.pipeline_mode<synchronous>, transform_indices = @transform_1, window_bounds = array<i64: 8, 256>}, {pipeline_mode = #tpu.pipeline_mode<synchronous>, transform_indices = @transform_2, window_bounds = array<i64: 1, 256>}, {pipeline_mode = #tpu.pipeline_mode<synchronous>, transform_indices = @transform_3, window_bounds = array<i64: 256, 256>}, {pipeline_mode = #tpu.pipeline_mode<synchronous>, transform_indices = @transform_4, window_bounds = array<i64: 1, 256>}, {pipeline_mode = #tpu.pipeline_mode<synchronous>, transform_indices = @transform_5, window_bounds = array<i64: 256, 128>}, {pipeline_mode = #tpu.pipeline_mode<synchronous>, transform_indices = @transform_6, window_bounds = array<i64: 1, 128>}, {transform_indices = @transform_7, window_bounds = array<i64: 32, 128>}]} {
    %c0 = arith.constant 0 : index
    %c0_0 = arith.constant 0 : index
    %0 = vector.load %arg1[%c0, %c0_0] : memref<32x8xf32, #tpu.memory_space<vmem>>, vector<32x8xf32>
    %1 = arith.truncf %0 : vector<32x8xf32> to vector<32x8xbf16>
    %c0_1 = arith.constant 0 : index
    %c0_2 = arith.constant 0 : index
    %2 = vector.load %arg2[%c0_1, %c0_2] : memref<8x256xbf16, #tpu.memory_space<vmem>>, vector<8x256xbf16>
    %cst = arith.constant dense<0.000000e+00> : vector<32x256xf32>
    %3 = tpu.matmul %1, %2, %cst {dimension_numbers = #tpu.dot_dimension_numbers<[1], [0], [0], [1], [0, 0, 1, 1], [], []>} : vector<32x8xbf16>, vector<8x256xbf16>, vector<32x256xf32> -> vector<32x256xf32>
    %c0_3 = arith.constant 0 : index
    %c0_4 = arith.constant 0 : index
    %4 = vector.load %arg3[%c0_3, %c0_4] : memref<1x256xf32, #tpu.memory_space<vmem>>, vector<1x256xf32>
    %5 = vector.broadcast %4 : vector<1x256xf32> to vector<32x256xf32>
    %6 = arith.addf %3, %5 : vector<32x256xf32>
    %cst_5 = arith.constant 0.000000e+00 : f32
    %7 = vector.broadcast %cst_5 : f32 to vector<32x256xf32>
    %8 = arith.maximumf %6, %7 : vector<32x256xf32>
    %9 = arith.truncf %8 : vector<32x256xf32> to vector<32x256xbf16>
    %c0_6 = arith.constant 0 : index
    %c0_7 = arith.constant 0 : index
    %10 = vector.load %arg4[%c0_6, %c0_7] : memref<256x256xbf16, #tpu.memory_space<vmem>>, vector<256x256xbf16>
    %cst_8 = arith.constant dense<0.000000e+00> : vector<32x256xf32>
    %11 = tpu.matmul %9, %10, %cst_8 {dimension_numbers = #tpu.dot_dimension_numbers<[1], [0], [0], [1], [0, 0, 1, 1], [], []>} : vector<32x256xbf16>, vector<256x256xbf16>, vector<32x256xf32> -> vector<32x256xf32>
    %c0_9 = arith.constant 0 : index
    %c0_10 = arith.constant 0 : index
    %12 = vector.load %arg5[%c0_9, %c0_10] : memref<1x256xf32, #tpu.memory_space<vmem>>, vector<1x256xf32>
    %13 = vector.broadcast %12 : vector<1x256xf32> to vector<32x256xf32>
    %14 = arith.addf %11, %13 : vector<32x256xf32>
    %cst_11 = arith.constant 0.000000e+00 : f32
    %15 = vector.broadcast %cst_11 : f32 to vector<32x256xf32>
    %16 = arith.maximumf %14, %15 : vector<32x256xf32>
    %17 = arith.truncf %16 : vector<32x256xf32> to vector<32x256xbf16>
    %c0_12 = arith.constant 0 : index
    %c0_13 = arith.constant 0 : index
    %18 = vector.load %arg6[%c0_12, %c0_13] : memref<256x128xbf16, #tpu.memory_space<vmem>>, vector<256x128xbf16>
    %cst_14 = arith.constant dense<0.000000e+00> : vector<32x128xf32>
    %19 = tpu.matmul %17, %18, %cst_14 {dimension_numbers = #tpu.dot_dimension_numbers<[1], [0], [0], [1], [0, 0, 1, 1], [], []>} : vector<32x256xbf16>, vector<256x128xbf16>, vector<32x128xf32> -> vector<32x128xf32>
    %c0_15 = arith.constant 0 : index
    %c0_16 = arith.constant 0 : index
    %20 = vector.load %arg7[%c0_15, %c0_16] : memref<1x128xf32, #tpu.memory_space<vmem>>, vector<1x128xf32>
    %21 = vector.broadcast %20 : vector<1x128xf32> to vector<32x128xf32>
    %22 = arith.addf %19, %21 : vector<32x128xf32>
    %23 = tpu.iota {dimensions = array<i32: 1>} : vector<32x128xi32>
    %c2_i32 = arith.constant 2 : i32
    %24 = vector.broadcast %c2_i32 : i32 to vector<32x128xi32>
    %25 = arith.cmpi eq, %23, %24 : vector<32x128xi32>
    %cst_17 = arith.constant 9.99999997E-7 : f32
    %cst_18 = arith.constant 1.000000e+00 : f32
    %26 = vector.broadcast %cst_17 : f32 to vector<32x128xf32>
    %27 = arith.maximumf %26, %22 : vector<32x128xf32>
    %28 = vector.broadcast %cst_18 : f32 to vector<32x128xf32>
    %29 = arith.minimumf %28, %27 : vector<32x128xf32>
    %30 = arith.select %25, %29, %22 : vector<32x128xi1>, vector<32x128xf32>
    %c0_19 = arith.constant 0 : index
    %c0_20 = arith.constant 0 : index
    %31 = vector.load %arg8[%c0_19, %c0_20] : memref<32x128xf32, #tpu.memory_space<vmem>>, vector<32x128xf32>
    tpu.vector_store %arg8[%c0_19, %c0_20], %30 {strides = array<i32>} : memref<32x128xf32, #tpu.memory_space<vmem>>, vector<32x128xf32>,
    return
  }
  func.func @transform_0(%arg0: i32) -> (i32, i32) {
    %c0_i32 = arith.constant 0 : i32
    %c0_i32_0 = arith.constant 0 : i32
    return %arg0, %c0_i32 : i32, i32
  }
  func.func @transform_1(%arg0: i32) -> (i32, i32) {
    %c0_i32 = arith.constant 0 : i32
    %c0_i32_0 = arith.constant 0 : i32
    %c0_i32_1 = arith.constant 0 : i32
    return %c0_i32, %c0_i32_0 : i32, i32
  }
  func.func @transform_2(%arg0: i32) -> (i32, i32) {
    %c0_i32 = arith.constant 0 : i32
    %c0_i32_0 = arith.constant 0 : i32
    %c0_i32_1 = arith.constant 0 : i32
    return %c0_i32, %c0_i32_0 : i32, i32
  }
  func.func @transform_3(%arg0: i32) -> (i32, i32) {
    %c0_i32 = arith.constant 0 : i32
    %c0_i32_0 = arith.constant 0 : i32
    %c0_i32_1 = arith.constant 0 : i32
    return %c0_i32, %c0_i32_0 : i32, i32
  }
  func.func @transform_4(%arg0: i32) -> (i32, i32) {
    %c0_i32 = arith.constant 0 : i32
    %c0_i32_0 = arith.constant 0 : i32
    %c0_i32_1 = arith.constant 0 : i32
    return %c0_i32, %c0_i32_0 : i32, i32
  }
  func.func @transform_5(%arg0: i32) -> (i32, i32) {
    %c0_i32 = arith.constant 0 : i32
    %c0_i32_0 = arith.constant 0 : i32
    %c0_i32_1 = arith.constant 0 : i32
    return %c0_i32, %c0_i32_0 : i32, i32
  }
  func.func @transform_6(%arg0: i32) -> (i32, i32) {
    %c0_i32 = arith.constant 0 : i32
    %c0_i32_0 = arith.constant 0 : i32
    %c0_i32_1 = arith.constant 0 : i32
    return %c0_i32, %c0_i32_0 : i32, i32
  }
  func.func @transform_7(%arg0: i32) -> (i32, i32) {
    %c0_i32 = arith.constant 0 : i32
    %c0_i32_0 = arith.constant 0 : i32
    return %arg0, %c0_i32 : i32, i32
  }
}

</mosaic_0001>

<bundles_post_ra>
// kernel: tpu_custom_call.1
= control target key start
LH: loop header
LB: loop body
LE: loop exit
PB: predicated region body
PF: predicated region fallthrough
CT: control target
= control target key end

     0   :  { %12 = vsyncpa [#allocation3], 0  ;;  %s1554_s0 = inlined_call_operand.vmem [shape: f32[64,8], index: 0, kind: input, shape index: {}]   ;;  %s1555_s1 = inlined_call_operand.vmem [shape: bf16[8,256], index: 1, kind: input, shape index: {}]   ;;  %s1556_s2 = inlined_call_operand.vmem [shape: f32[1,256], index: 2, kind: input, shape index: {}]   ;;  %s1557_s3 = inlined_call_operand.hbm [shape: bf16[256,256], index: 3, kind: input, shape index: {}]   ;;  %s1558_s4 = inlined_call_operand.vmem [shape: f32[1,256], index: 4, kind: input, shape index: {}]   ;;  %s1559_s5 = inlined_call_operand.hbm [shape: bf16[256,128], index: 5, kind: input, shape index: {}]   ;;  %s1560_s6 = inlined_call_operand.vmem [shape: f32[1,128], index: 6, kind: input, shape index: {}]   ;;  %s1561_s7 = inlined_call_operand.hbm [shape: f32[64,128], index: 7, kind: output, shape index: {}]  }
   0x1   :  { %13 = vsyncpa [#allocation6], 0 }
   0x2   :  { %14 = vsyncpa [#allocation4], 0 }
   0x3   :  { %16 = vsyncpa [#allocation4 + $0x1], 0  ;;  %s1388_s24 = smov 0   ;;  %s1390_s25 = smov 0  }
   0x4   :  { %s1392_s26 = smov 0   ;;  %s1394_s27 = smov 0  }
   0x5 LB: > { %s1409_s28 = sadd.s32 4294967295, %s1336_s27   ;;  %s984_s29 = sadd.s32 4294967294, %s1336_s27   ;;  %s1336_s27 = sphi %s1394_s27, %s1575_s27   ;;  %s1332_s26 = sphi %s1392_s26, %s1574_s26   ;;  %s1328_s25 = sphi %s1390_s25, %s1573_s25   ;;  %s1324_s24 = sphi %s1388_s24, %s1572_s24  }
   0x6   : > { %s1413_s30 = sadd.s32 1, %s1336_s27   ;;  %s181_s8 = sadd.s32 1, %s1332_s26 }
   0x7   : > { %s178_s9 = ssub.s32 %s1336_s27, %s1413_s30  ;;  %p191_p0 = scmp.ne.s32.totalorder %s1332_s26, %s1328_s25 }
   0x8   : > { %p179_p1 = scmp.eq.s32.totalorder %s178_s9, 0  ;;  %p192_p2 = scmp.eq.s32.totalorder %s1409_s28, 1 }
   0x9   : > { %p197_p3 = scmp.ne.s32.totalorder %s1328_s25, %s1324_s24  ;;  %p198_p4 = scmp.eq.s32.totalorder %s984_s29, 1 }
   0xa   : > { %s1424_s10 = scalar_select %p179_p1, %s1332_s26, %s181_s8  }
   0xb   : > { %p1426_p5 = por %p192_p2, %p191_p0  ;;  %p1430_p6 = por %p198_p4, %p197_p3 }
   0xc   : > { %p985_p7 = scmp.ge.s32.totalorder %s1336_s27, 1  ;;  %p205_p8 = scmp.lt.s32.totalorder %s1336_s27, 3 }
   0xd   : > { %s1564_s12 = scalar_select %p1430_p6, 1, 0 }
   0xe   : > { %p1562_p9 = scmp.eq.s32.totalorder %s1409_s28, 0  ;;  %p1437_p10 = pnand %p985_p7, %p205_p8 }
   0xf   : > { %s1338_s14 = smov [#allocation2]   ;;  %s1339_s17 = smov [#allocation5]  }
  0x10   : > { %s223_s15 = sshll.u32 %s1338_s14, 4  ;;  %p1093_p11 = pneg %p1437_p10  ;;  %s224_s15 = int_to_ptr.vmem [resolvable:$true] %s223_s15 }
  0x11   : > { %s239_s18 = sshll.u32 %s1339_s17, 4  ;;  %s1227_s19 = scalar_lea.vmem %s224_s15, 4096  ;;  %s240_s18 = int_to_ptr.vmem [resolvable:$true] %s239_s18 }
  0x12   : > { %p1445_p12 = pnand %p1562_p9, %p1093_p11  ;;  %p1228_p0 = scmp.ne.s32.totalorder %s224_s15, %s1227_s19 }
  0x13   : > { %p1235_p3 = scmp.lt.s32.totalorder %s224_s15, %s224_s15  ;;  %p1236_p4 = scmp.lt.s32.totalorder %s1227_s19, %s1227_s19 }
  0x14   : > { %p1218_p13 = pneg %p1445_p12 }
  0x15   : > { %p1237_p7 = por %p1236_p4, %p1235_p3 }
  0x16   : > { %p1230_p1 = pnand %p1228_p0, %p1218_p13 }
  0x18   : > { %p1231_p2 = pneg %p1230_p1 }
  0x1a   : > { %p1238_p8 = pnand %p1237_p7, %p1231_p2 }
  0x1c   : > { %1241 = shalt.err (!%p1238_p8)
}
  0x1d   : > { %s1340_s20 = smov 128   ;;  %s1341_s21 = smov 8  }
  0x1e   : > { %1096 = dma.hbm_to_vmem [thread:$0]  (!%p1445_p12), %s1557_s3, 4096, %s224_s15, [#allocation3], %s1340_s20, %s1340_s20, %s1341_s21  }
  0x1f   : > { %s1253_s29 = scalar_lea.vmem %s240_s18, 2048  ;;  %p1261_p9 = scmp.lt.s32.totalorder %s240_s18, %s240_s18 }
  0x20   : > { %p1254_p11 = scmp.ne.s32.totalorder %s240_s18, %s1253_s29  ;;  %p1262_p6 = scmp.lt.s32.totalorder %s1253_s29, %s1253_s29 }
  0x22   : > { %p1256_p0 = pnand %p1254_p11, %p1218_p13  ;;  %p1263_p3 = por %p1262_p6, %p1261_p9 }
  0x24   : > { %p1257_p1 = pneg %p1256_p0 }
  0x26   : > { %p1264_p2 = pnand %p1263_p3, %p1257_p1 }
  0x28   : > { %1267 = shalt.err (!%p1264_p2)
}
  0x29   : > { %s1342_s8 = smov 64   ;;  %s1343_s9 = smov 4  }
  0x2a   : > { %1099 = dma.hbm_to_vmem [thread:$0]  (!%p1445_p12), %s1559_s5, 2048, %s240_s18, [#allocation6], %s1342_s8, %s1342_s8, %s1343_s9  }
  0x2b   : > { %267 = sbr.rel (%p1437_p10) target bundleno = 703 (0x2bf), region = 48  ;;  %p1567_p4 = scmp.eq.s32.totalorder (!%p1437_p10), %s1409_s28, 0 }
  0x30   : > { %1311 = dma.done.wait (%p1567_p4), [#allocation3], 4096   ;;  %p1568_p13 = pmov %p1567_p4 }
  0x31   : > { %p1569_p6 = pmov %p1567_p4 }
  0x32   : > { %1313 = vsyncadd (%p1568_p13), [#allocation3], 4294963200 }
  0x33   : > { %1315 = dma.done.wait (%p1569_p6), [#allocation6], 2048   ;;  %p1570_p9 = pmov %p1567_p4 }
  0x34   : > { %s993_s15 = sshll.u32 %s1409_s28, 2  ;;  %v1344_v0 = vmov 0   ;;  %v317_v1 = vld [vmem:[%s1555_s1] sm:$0xff]  ;;  %vm342_vm0 = vcmask 1043456   ;;  %v1152_v6 = vld [vmem:[#allocation2 + $0x74] ss:$8 sps:$4 sm:$0xff]   ;;  %v320_v53 = vlaneseq }
  0x35   : > { %1317 = vsyncadd (%p1570_p9), [#allocation6], 4294965248  ;;  %381 = vmatprep.mubr.bf16.mxu0 %v1344_v0  ;;  %p304_p12 = scmp.lt.s32.totalorder %s993_s15, 7  ;;  %v996_v4 = vcombine.high %v317_v1, %v317_v1  ;;  %v995_v5 = vcombine.low %v317_v1, %v317_v1  ;;  %v1154_v7 = vld [vmem:[#allocation2 + $0x70] ss:$8 sps:$4 sm:$0xff]   ;;  %vm335_vm1 = vcmask 64512   ;;  %618 = vmatprep.subr.bf16.mxu1 %v1152_v6 }
  0x36   : > { %v1155_v10 = vld [vmem:[#allocation2 + $0x64] ss:$8 sps:$4 sm:$0xff]   ;;  %619 = vmatpush1.bf16.msra.mxu1 %v1154_v7  ;;  %v1157_v11 = vld [vmem:[#allocation2 + $0x60] ss:$8 sps:$4 sm:$0xff]   ;;  %v1158_v12 = vld [vmem:[#allocation2 + $0x54] ss:$8 sps:$4 sm:$0xff]  }
  0x37   : > { %s1577_s15 = smov (!%p304_p12, %s993_s15), 7  ;;  %997 = vmatprep.subr.msk.bf16.mxu0 %vm342_vm0, %v996_v4  ;;  %v344_v8 = vsel %vm342_vm0, %v995_v5, 0  ;;  %620 = vmatprep.subr.bf16.mxu1 %v1155_v10  ;;  %v1160_v15 = vld [vmem:[#allocation2 + $0x50] ss:$8 sps:$4 sm:$0xff]   ;;  %v1161_v16 = vld [vmem:[#allocation2 + $0x44] ss:$8 sps:$4 sm:$0xff]  }
  0x38   : > { %s994_s13 = sshll.u32 %s1577_s15, 3  ;;  %364 = vmatpush1.bf16.msra.mxu0 %v344_v8  ;;  %v1163_v18 = vld [vmem:[#allocation2 + $0x40] ss:$8 sps:$4 sm:$0xff]   ;;  %v1164_v19 = vld [vmem:[#allocation2 + $0x34] ss:$8 sps:$4 sm:$0xff]   ;;  %v321_v54 = vshrl.u32 %v320_v53, 7 }
  0x39   : > { %s307_s19 = scalar_lea.vmem %s1554_s0, %s994_s13  ;;  %v1166_v20 = vld [vmem:[#allocation2 + $0x30] ss:$8 sps:$4 sm:$0xff]   ;;  %v1167_v21 = vld [vmem:[#allocation2 + $0x24] ss:$8 sps:$4 sm:$0xff]   ;;  %v1169_v22 = vld [vmem:[#allocation2 + $0x20] ss:$8 sps:$4 sm:$0xff]  }
  0x3a   : > { %v311_v2 = vld [vmem:[%s307_s19] sm:$0xff]  ;;  %v312_v3 = vld [vmem:[%s307_s19 + $0x8] sm:$0xff]  ;;  %v313_v13 = vld [vmem:[%s307_s19 + $0x10] sm:$0xff]  ;;  %621 = vmatpush1.bf16.msra.mxu1 %v1157_v11  ;;  %v326_v55 = vsub.s32 1, %v321_v54  ;;  %v322_v56 = vsub.s32 0, %v321_v54  ;;  %s300_s17 = sand.u32 1, %s1328_s25  }
  0x3b   : > { %v315_v9 = vpack.c.bf16 %v312_v3, %v311_v2  ;;  %v314_v14 = vld [vmem:[%s307_s19 + $0x18] sm:$0xff]  ;;  %622 = vmatprep.subr.bf16.mxu1 %v1158_v12  ;;  %v1173_v25 = vld [vmem:[#allocation2 + $0x4] ss:$8 sps:$4 sm:$0xff]   ;;  %v1175_v26 = vld [vmem:[#allocation2] ss:$8 sps:$4 sm:$0xff]   ;;  %s992_s15 = sshll.u32 %s300_s17, 5 }
  0x3c   : > { %v316_v17 = vpack.c.bf16 %v314_v14, %v313_v13  ;;  %v1170_v23 = vld [vmem:[#allocation2 + $0x14] ss:$8 sps:$4 sm:$0xff]   ;;  %v1172_v24 = vld [vmem:[#allocation2 + $0x10] ss:$8 sps:$4 sm:$0xff]   ;;  %v1179_v29 = vld [vmem:[#allocation2 + $0xe4] ss:$8 sps:$4 sm:$0xff]  }
  0x3d   : > { %998 = vmatmul.mubr.msk.bf16.vlgmr.msra.gmra.mxu0 %vm335_vm1, %v315_v9  ;;  %v1176_v27 = vld [vmem:[#allocation2 + $0xf4] ss:$8 sps:$4 sm:$0xff]   ;;  %v1178_v28 = vld [vmem:[#allocation2 + $0xf0] ss:$8 sps:$4 sm:$0xff]   ;;  %v1181_v30 = vld [vmem:[#allocation2 + $0xe0] ss:$8 sps:$4 sm:$0xff]  }
  0x3e   : > { %391 = vmatprep.mubr.bf16.mxu0 %v1344_v0  ;;  %623 = vmatpush1.bf16.msra.mxu1 %v1160_v15  ;;  %v1182_v31 = vld [vmem:[#allocation2 + $0xd4] ss:$8 sps:$4 sm:$0xff]   ;;  %v1184_v32 = vld [vmem:[#allocation2 + $0xd0] ss:$8 sps:$4 sm:$0xff]   ;;  %v1185_v33 = vld [vmem:[#allocation2 + $0xc4] ss:$8 sps:$4 sm:$0xff]  }
  0x3f   : > { %624 = vmatprep.subr.bf16.mxu1 %v1161_v16  ;;  %v1187_v34 = vld [vmem:[#allocation2 + $0xc0] ss:$8 sps:$4 sm:$0xff]   ;;  %v1188_v35 = vld [vmem:[#allocation2 + $0xb4] ss:$8 sps:$4 sm:$0xff]   ;;  %v1190_v36 = vld [vmem:[#allocation2 + $0xb0] ss:$8 sps:$4 sm:$0xff]  }
  0x40   : > { %v1191_v37 = vld [vmem:[#allocation2 + $0xa4] ss:$8 sps:$4 sm:$0xff]   ;;  %v1193_v38 = vld [vmem:[#allocation2 + $0xa0] ss:$8 sps:$4 sm:$0xff]   ;;  %v1194_v39 = vld [vmem:[#allocation2 + $0x94] ss:$8 sps:$4 sm:$0xff]  }
  0x41   : > { %v1196_v40 = vld [vmem:[#allocation2 + $0x90] ss:$8 sps:$4 sm:$0xff]   ;;  %v1197_v41 = vld [vmem:[#allocation2 + $0x84] ss:$8 sps:$4 sm:$0xff]   ;;  %v1199_v42 = vld [vmem:[#allocation2 + $0x80] ss:$8 sps:$4 sm:$0xff]  }
  0x42   : > { %625 = vmatpush1.bf16.msra.mxu1 %v1163_v18  ;;  %v1200_v43 = vld [vmem:[#allocation5 + $0x78] sm:$0xff]   ;;  %v1202_v45 = vld [vmem:[#allocation5 + $0x70] sm:$0xff]   ;;  %v1204_v47 = vld [vmem:[#allocation5 + $0x68] sm:$0xff]   ;;  %s302_s13 = scalar_lea.vmem [#allocation7], %s992_s15  ;;  %s1054_s18 = sshll.u32 %s1409_s28, 9 }
  0x43   : > { %626 = vmatprep.subr.bf16.mxu1 %v1164_v19  ;;  %v1201_v44 = vld [vmem:[#allocation5 + $0x38] sm:$0xff]   ;;  %1055 = vmatprep.subr.bf16.mxu0 %v1200_v43  ;;  %v1203_v46 = vld [vmem:[#allocation5 + $0x30] sm:$0xff]   ;;  %v1205_v48 = vld [vmem:[#allocation5 + $0x28] sm:$0xff]   ;;  %s900_s16 = sshll.u32 %s302_s13, 4  ;;  %s1509_s21 = scalar_lea.hbm %s1561_s7, %s1054_s18  ;;  %s1504_s16 = int_to_ptr.vmem [resolvable:$true] %s900_s16 }
  0x44   : > { %1056 = vmatpush3.bf16.msra.mxu0 %v1201_v44  ;;  %v1206_v49 = vld [vmem:[#allocation5 + $0x60] sm:$0xff]   ;;  %v1208_v51 = vld [vmem:[#allocation5 + $0x58] sm:$0xff]   ;;  %s1514_s28 = scalar_lea.sflag [#allocation4], %s300_s17  ;;  %s1268_s22 = scalar_lea.vmem %s1504_s16, 512 }
  0x45   : > { %999 = vmatmul.mubr.msk.bf16.gmra.mxu0 %vm335_vm1, %v316_v17  ;;  %1057 = vmatprep.subr.bf16.mxu0 %v1202_v45  ;;  %v1207_v50 = vld [vmem:[#allocation5 + $0x20] sm:$0xff]   ;;  %v1209_v52 = vld [vmem:[#allocation5 + $0x18] sm:$0xff]   ;;  %p1269_p10 = scmp.ne.s32.totalorder %s1504_s16, %s1268_s22  ;;  %s1345_s23 = smov [#allocation7]  }
  0x46   : > { %627 = vmatpush1.bf16.msra.mxu1 %v1166_v20  ;;  %v318_v57 = vld [vmem:[%s1556_s2] sm:$0x3]  ;;  %s1272_s29 = sshll.u32 %s1345_s23, 4  ;;  %s1273_s29 = int_to_ptr.vmem [resolvable:$false] %s1272_s29 }
  0x47   : > { %628 = vmatprep.subr.bf16.mxu1 %v1167_v21  ;;  %v327_v59 = vrot.slane %v318_v57, %v326_v55  ;;  %v323_v60 = vrot.slane %v318_v57, %v322_v56  ;;  %p1270_p7 = pnand %p1269_p10, %p1426_p5  ;;  %s1274_s8 = scalar_lea.vmem %s1273_s29, 1024 }
  0x48   : > { %1058 = vmatpush3.bf16.msra.mxu0 %v1203_v46  ;;  %p1275_p11 = scmp.lt.s32.totalorder %s1504_s16, %s1273_s29  ;;  %p1276_p0 = scmp.lt.s32.totalorder %s1274_s8, %s1268_s22 }
  0x49   : > { %1059 = vmatprep.subr.bf16.mxu0 %v1204_v47  ;;  %p1271_p8 = pneg %p1270_p7 }
  0x4a   : > { %629 = vmatpush1.bf16.msra.mxu1 %v1169_v22  ;;  %p1277_p1 = por %p1276_p0, %p1275_p11 }
  0x4b   : > { %630 = vmatprep.subr.bf16.mxu1 %v1170_v23 }
  0x4c   : > { %1060 = vmatpush3.bf16.msra.mxu0 %v1205_v48  ;;  %p1278_p3 = pnand %p1277_p1, %p1271_p8 }
  0x4d   : > { %1061 = vmatprep.subr.bf16.mxu0 %v1206_v49 }
  0x4e   : > { %631 = vmatpush1.bf16.msra.mxu1 %v1172_v24  ;;  %v1210_v24 = vld [vmem:[#allocation5 + $0x50] sm:$0xff]  }
  0x4f   : > { %632 = vmatprep.subr.bf16.mxu1 %v1173_v25  ;;  %v1211_v25 = vld [vmem:[#allocation5 + $0x10] sm:$0xff]  }
  0x50   : > { %1062 = vmatpush3.bf16.msra.mxu0 %v1207_v50 }
  0x51   : > { %1063 = vmatprep.subr.bf16.mxu0 %v1208_v51 }
  0x52   : > { %633 = vmatpush1.bf16.msra.mxu1 %v1175_v26  ;;  %v1212_v26 = vld [vmem:[#allocation5 + $0x48] sm:$0xff]  }
  0x53   : > { %634 = vmatprep.subr.bf16.mxu1 %v1176_v27  ;;  %v1213_v27 = vld [vmem:[#allocation5 + $0x8] sm:$0xff]  }
  0x54   : > { %1064 = vmatpush3.bf16.msra.mxu0 %v1209_v52 }
  0x55   : > { %1065 = vmatprep.subr.bf16.mxu0 %v1210_v24 }
  0x56   : > { %635 = vmatpush2.bf16.msra.mxu1 %v1178_v28  ;;  %v1214_v28 = vld [vmem:[#allocation5 + $0x40] sm:$0xff]  }
  0x57   : > { %636 = vmatprep.subr.bf16.mxu1 %v1179_v29  ;;  %v1215_v29 = vld [vmem:[#allocation5] sm:$0xff]  }
  0x58   : > { %1066 = vmatpush3.bf16.msra.mxu0 %v1211_v25 }
  0x59   : > { %1067 = vmatprep.subr.bf16.mxu0 %v1212_v26 }
  0x5a   : > { %637 = vmatpush2.bf16.msra.mxu1 %v1181_v30  ;;  %v446_v30 = vld [vmem:[%s1558_s4] sm:$0x3] }
  0x5b   : > { %638 = vmatprep.subr.bf16.mxu1 %v1182_v31 }
  0x5c   : > { %1068 = vmatpush3.bf16.msra.mxu0 %v1213_v27 }
  0x5d   : > { %1069 = vmatprep.subr.bf16.mxu0 %v1214_v28 }
  0x5e   : > { %639 = vmatpush2.bf16.msra.mxu1 %v1184_v32  ;;  %v455_v32 = vrot.slane %v446_v30, %v326_v55 }
  0x5f   : > { %640 = vmatprep.subr.bf16.mxu1 %v1185_v33  ;;  %v451_v33 = vrot.slane %v446_v30, %v322_v56 }
  0x60   : > { %1070 = vmatpush3.bf16.msra.mxu0 %v1215_v29 }
  0x62   : > { %641 = vmatpush2.bf16.msra.mxu1 %v1187_v34 }
  0x63   : > { %642 = vmatprep.subr.bf16.mxu1 %v1188_v35 }
  0x66   : > { %643 = vmatpush2.bf16.msra.mxu1 %v1190_v36 }
  0x67   : > { %644 = vmatprep.subr.bf16.mxu1 %v1191_v37 }
  0x6a   : > { %645 = vmatpush2.bf16.msra.mxu1 %v1193_v38 }
  0x6b   : > { %646 = vmatprep.subr.bf16.mxu1 %v1194_v39 }
  0x6e   : > { %647 = vmatpush2.bf16.msra.mxu1 %v1196_v40 }
  0x6f   : > { %648 = vmatprep.subr.bf16.mxu1 %v1197_v41 }
  0x72   : > { %649 = vmatpush2.bf16.msra.mxu1 %v1199_v42 }
  0xfd   : > { %v383_v58 = vpop.f32.mrf.mxu0 }
  0xfe   : > { %v384_v1 = vadd.f32 %v383_v58, %v323_v60 }
  0xff   : > { %v385_v61 = vpop.f32.mrf.mxu0 }
 0x100   : > { %v386_v63 = vadd.f32 %v385_v61, %v327_v59  ;;  %v402_v8 = vmax.f32 %v384_v1, 0.0 }
 0x101   : > { %v387_v62 = vpop.f32.mrf.mxu0 }
 0x102   : > { %v388_v0 = vadd.f32 %v387_v62, %v323_v60  ;;  %v403_v6 = vmax.f32 %v386_v63, 0.0  ;;  %v1032_v63 = vld [vmem:[%s1560_s6] ss:$0 sm:$0xff] }
 0x103   : > { %v389_v2 = vpop.f32.mrf.mxu0 }
 0x104   : > { %v390_v3 = vadd.f32 %v389_v2, %v327_v59  ;;  %v404_v4 = vmax.f32 %v388_v0, 0.0  ;;  %v868_v2 = vand.u32 127, %v320_v53 }
 0x105   : > { %v393_v5 = vpop.f32.mrf.mxu0 }
 0x106   : > { %v405_v7 = vmax.f32 %v390_v3, 0.0  ;;  %v410_v11 = vpack.c.bf16 %v404_v4, %v402_v8  ;;  %v394_v15 = vadd.f32 %v393_v5, %v323_v60  ;;  %vm869_vm2 = vcmp.eq.s32.totalorder %v868_v2, 2 }
 0x107   : > { %v395_v9 = vpop.f32.mrf.mxu0 }
 0x108   : > { %v411_v10 = vpack.c.bf16 %v405_v7, %v403_v6  ;;  %v396_v13 = vadd.f32 %v395_v9, %v327_v59  ;;  %v406_v21 = vmax.f32 %v394_v15, 0.0 }
 0x109   : > { %v397_v12 = vpop.f32.mrf.mxu0 }
 0x10a   : > { %v398_v14 = vadd.f32 %v397_v12, %v323_v60  ;;  %650 = vmatprep.mubr.bf16.mxu1 %v411_v10  ;;  %v407_v19 = vmax.f32 %v396_v13, 0.0 }
 0x10b   : > { %v399_v16 = vpop.f32.mrf.mxu0  ;;  %651 = vmatmul.mubr.bf16.vlgmr.msra.gmra.mxu1 %v410_v11 }
 0x10c   : > { %v400_v17 = vadd.f32 %v399_v16, %v327_v59  ;;  %v408_v18 = vmax.f32 %v398_v14, 0.0 }
 0x10e   : > { %v409_v20 = vmax.f32 %v400_v17, 0.0  ;;  %v412_v23 = vpack.c.bf16 %v408_v18, %v406_v21 }
 0x110   : > { %v413_v22 = vpack.c.bf16 %v409_v20, %v407_v19 }
 0x112   : > { %660 = vmatprep.mubr.bf16.mxu1 %v413_v22 }
 0x113   : > { %661 = vmatmul.mubr.bf16.gmra.mxu1 %v412_v23 }
 0x1cb   : > { %v652_v31 = vpop.f32.mrf.mxu1 }
 0x1cc   : > { %v653_v38 = vadd.f32 %v652_v31, %v451_v33 }
 0x1cd   : > { %v654_v34 = vpop.f32.mrf.mxu1 }
 0x1ce   : > { %v655_v36 = vadd.f32 %v654_v34, %v455_v32  ;;  %v671_v45 = vmax.f32 %v653_v38, 0.0 }
 0x1cf   : > { %v656_v35 = vpop.f32.mrf.mxu1 }
 0x1d0   : > { %v657_v37 = vadd.f32 %v656_v35, %v451_v33  ;;  %v672_v43 = vmax.f32 %v655_v36, 0.0 }
 0x1d1   : > { %v658_v39 = vpop.f32.mrf.mxu1 }
 0x1d2   : > { %v659_v40 = vadd.f32 %v658_v39, %v455_v32  ;;  %v673_v41 = vmax.f32 %v657_v37, 0.0 }
 0x1d3   : > { %v662_v42 = vpop.f32.mrf.mxu1 }
 0x1d4   : > { %v674_v44 = vmax.f32 %v659_v40, 0.0  ;;  %v679_v48 = vpack.c.bf16 %v673_v41, %v671_v45  ;;  %v663_v52 = vadd.f32 %v662_v42, %v451_v33 }
 0x1d5   : > { %v664_v46 = vpop.f32.mrf.mxu1 }
 0x1d6   : > { %v680_v47 = vpack.c.bf16 %v674_v44, %v672_v43  ;;  %v665_v50 = vadd.f32 %v664_v46, %v455_v32  ;;  %v675_v59 = vmax.f32 %v663_v52, 0.0 }
 0x1d7   : > { %v666_v49 = vpop.f32.mrf.mxu1 }
 0x1d8   : > { %v667_v51 = vadd.f32 %v666_v49, %v451_v33  ;;  %850 = vmatprep.mubr.bf16.mxu0 %v680_v47  ;;  %v676_v57 = vmax.f32 %v665_v50, 0.0 }
 0x1d9   : > { %v668_v54 = vpop.f32.mrf.mxu1  ;;  %851 = vmatmul.mubr.bf16.vlgmr.msra.gmra.mxu0 %v679_v48 }
 0x1da   : > { %v669_v55 = vadd.f32 %v668_v54, %v455_v32  ;;  %v677_v56 = vmax.f32 %v667_v51, 0.0 }
 0x1dc   : > { %v678_v58 = vmax.f32 %v669_v55, 0.0  ;;  %v681_v61 = vpack.c.bf16 %v677_v56, %v675_v59 }
 0x1de   : > { %v682_v60 = vpack.c.bf16 %v678_v58, %v676_v57 }
 0x1e0   : > { %858 = vmatprep.mubr.bf16.mxu0 %v682_v60 }
 0x1e1   : > { %859 = vmatmul.mubr.bf16.gmra.mxu0 %v681_v61 }
 0x299   : > { %v1071_v62 = vpop.f32.mrf.mxu0 }
 0x29b   : > { %v1072_v0 = vpop.f32.mrf.mxu0 }
 0x29c   : > { %v1073_v1 = vadd.f32 %v1072_v0, %v1071_v62 }
 0x29d   : > { %v1074_v3 = vpop.f32.mrf.mxu0 }
 0x29e   : > { %v853_v4 = vadd.f32 %v1073_v1, %v1032_v63 }
 0x29f   : > { %v1075_v5 = vpop.f32.mrf.mxu0 }
 0x2a0   : > { %v870_v6 = vmax.f32 %v853_v4, 1e-06  ;;  %v1076_v7 = vadd.f32 %v1075_v5, %v1074_v3 }
 0x2a1   : > { %v1077_v8 = vpop.f32.mrf.mxu0 }
 0x2a2   : > { %v874_v9 = vmin.f32 %v870_v6, 1.0  ;;  %v856_v10 = vadd.f32 %v1076_v7, %v1032_v63 }
 0x2a3   : > { %v1078_v11 = vpop.f32.mrf.mxu0 }
 0x2a4   : > { %v878_v12 = vsel %vm869_vm2, %v874_v9, %v853_v4  ;;  %v871_v13 = vmax.f32 %v856_v10, 1e-06  ;;  %v1079_v14 = vadd.f32 %v1078_v11, %v1077_v8 }
 0x2a5   : > { %882 = vst [vmem:[%s302_s13] sm:$0xff] %v878_v12  ;;  %v1080_v53 = vpop.f32.mrf.mxu0 }
 0x2a6   : > { %v875_v15 = vmin.f32 %v871_v13, 1.0  ;;  %v861_v16 = vadd.f32 %v1079_v14, %v1032_v63 }
 0x2a7   : > { %v1081_v17 = vpop.f32.mrf.mxu0 }
 0x2a8   : > { %v879_v18 = vsel %vm869_vm2, %v875_v15, %v856_v10  ;;  %v872_v19 = vmax.f32 %v861_v16, 1e-06  ;;  %v1082_v20 = vadd.f32 %v1081_v17, %v1080_v53 }
 0x2a9   : > { %883 = vst [vmem:[%s302_s13 + $0x8] sm:$0xff] %v879_v18 }
 0x2aa   : > { %v876_v21 = vmin.f32 %v872_v19, 1.0  ;;  %v864_v22 = vadd.f32 %v1082_v20, %v1032_v63 }
 0x2ac   : > { %v880_v23 = vsel %vm869_vm2, %v876_v21, %v861_v16  ;;  %v873_v24 = vmax.f32 %v864_v22, 1e-06 }
 0x2ad   : > { %884 = vst [vmem:[%s302_s13 + $0x10] sm:$0xff] %v880_v23 }
 0x2ae   : > { %v877_v25 = vmin.f32 %v873_v24, 1.0 }
 0x2b0   : > { %v881_v26 = vsel %vm869_vm2, %v877_v25, %v864_v22 }
 0x2b1   : > { %885 = vst [vmem:[%s302_s13 + $0x18] sm:$0xff] %v881_v26 }
 0x2b2   : > { %1281 = shalt.err (!%p1278_p3)
}
 0x2b3   : > { %s1282_s9 = scalar_lea.hbm %s1509_s21, 512  ;;  %s1286_s15 = scalar_lea.hbm %s1561_s7, 1024 }
 0x2b4   : > { %p1283_p2 = scmp.ne.s32.totalorder %s1509_s21, %s1282_s9  ;;  %p1287_p6 = scmp.lt.s32.totalorder %s1509_s21, %s1561_s7 }
 0x2b5   : > { %p1288_p9 = scmp.lt.s32.totalorder %s1286_s15, %s1282_s9 }
 0x2b6   : > { %p1284_p4 = pnand %p1283_p2, %p1426_p5 }
 0x2b7   : > { %p1289_p12 = por %p1288_p9, %p1287_p6 }
 0x2b8   : > { %p1285_p13 = pneg %p1284_p4 }
 0x2ba   : > { %p1290_p10 = pnand %p1289_p12, %p1285_p13 }
 0x2bc   : > { %1293 = shalt.err (!%p1290_p10)
}
 0x2bd   : > { %s1346_s19 = smov 128   ;;  %s1347_s20 = smov 8  }
 0x2be   : > { %1091 = dma.vmem_to_hbm [thread:$0]  (%p1426_p5), %s1504_s16, 512, %s1509_s21, %s1514_s28, %s1346_s19, %s1346_s19, %s1347_s20  }
 0x2bf PF: > { %p1108_p7 = scmp.ge.s32.totalorder %s1336_s27, 2  ;;  %s915_s22 = sand.u32 1, %s1324_s24  }
 0x2c0   : > { %p1571_p8 = scmp.ne.s32.totalorder %s1564_s12, 0  ;;  %s916_s23 = scalar_lea.sflag [#allocation4], %s915_s22 }
 0x2c2   : > { %p1101_p11 = pnand %p1108_p7, %p1571_p8 }
 0x2c4   : > { %p1102_p0 = pneg %p1101_p11 }
 0x2c6   : > { %1319 = dma.done.wait (%p1102_p0), %s916_s23, 512  }
 0x2c7   : > { %1321 = vsyncadd (%p1102_p0), %s916_s23, 4294966784  ;;  %p19_p1 = scmp.ge.s32.totalorder %s1413_s30, 4   ;;  %s1572_s24 = smov %s1328_s25 }
 0x2c8   : > { %s1573_s25 = smov %s1332_s26  ;;  %s1574_s26 = smov %s1424_s10 }
 0x2c9   : > { %s1575_s27 = smov %s1413_s30  ;;  %21 = sbr.rel (!%p19_p1) target bundleno = 5 (0x5), region = 92 }
 0x2ce   :  { %921 = vsyncpa [#allocation3], 1 }
 0x2cf   :  { %923 = vsyncpa [#allocation3 + $0x1], 1 }
 0x2d0   :  { %924 = vsyncpa [#allocation6], 1 }
 0x2d1   :  { %925 = vsyncpa [#allocation4], 1 }
 0x2d2   :  { %927 = vsyncpa [#allocation4 + $0x1], 1 }

// kernel: tpu_custom_call.1
= control target key start
LH: loop header
LB: loop body
LE: loop exit
PB: predicated region body
PF: predicated region fallthrough
CT: control target
= control target key end

     0   :  { %12 = vsyncpa [#allocation3], 0  ;;  %s1554_s0 = inlined_call_operand.vmem [shape: f32[64,8], index: 0, kind: input, shape index: {}]   ;;  %s1555_s1 = inlined_call_operand.vmem [shape: bf16[8,256], index: 1, kind: input, shape index: {}]   ;;  %s1556_s2 = inlined_call_operand.vmem [shape: f32[1,256], index: 2, kind: input, shape index: {}]   ;;  %s1557_s3 = inlined_call_operand.hbm [shape: bf16[256,256], index: 3, kind: input, shape index: {}]   ;;  %s1558_s4 = inlined_call_operand.vmem [shape: f32[1,256], index: 4, kind: input, shape index: {}]   ;;  %s1559_s5 = inlined_call_operand.hbm [shape: bf16[256,128], index: 5, kind: input, shape index: {}]   ;;  %s1560_s6 = inlined_call_operand.vmem [shape: f32[1,128], index: 6, kind: input, shape index: {}]   ;;  %s1561_s7 = inlined_call_operand.hbm [shape: f32[64,128], index: 7, kind: output, shape index: {}]  }
   0x1   :  { %13 = vsyncpa [#allocation6], 0 }
   0x2   :  { %14 = vsyncpa [#allocation4], 0 }
   0x3   :  { %16 = vsyncpa [#allocation4 + $0x1], 0  ;;  %s1388_s24 = smov 0   ;;  %s1390_s25 = smov 0  }
   0x4   :  { %s1392_s26 = smov 0   ;;  %s1394_s27 = smov 0  }
   0x5 LB: > { %s1409_s28 = sadd.s32 4294967295, %s1336_s27   ;;  %s984_s29 = sadd.s32 4294967294, %s1336_s27   ;;  %s1336_s27 = sphi %s1394_s27, %s1575_s27   ;;  %s1332_s26 = sphi %s1392_s26, %s1574_s26   ;;  %s1328_s25 = sphi %s1390_s25, %s1573_s25   ;;  %s1324_s24 = sphi %s1388_s24, %s1572_s24  }
   0x6   : > { %s1413_s30 = sadd.s32 1, %s1336_s27   ;;  %s181_s8 = sadd.s32 1, %s1332_s26 }
   0x7   : > { %s178_s9 = ssub.s32 %s1336_s27, %s1413_s30  ;;  %p191_p0 = scmp.ne.s32.totalorder %s1332_s26, %s1328_s25 }
   0x8   : > { %p179_p1 = scmp.eq.s32.totalorder %s178_s9, 0  ;;  %p192_p2 = scmp.eq.s32.totalorder %s1409_s28, 1 }
   0x9   : > { %p197_p3 = scmp.ne.s32.totalorder %s1328_s25, %s1324_s24  ;;  %p198_p4 = scmp.eq.s32.totalorder %s984_s29, 1 }
   0xa   : > { %s1424_s10 = scalar_select %p179_p1, %s1332_s26, %s181_s8  }
   0xb   : > { %p1426_p5 = por %p192_p2, %p191_p0  ;;  %p1430_p6 = por %p198_p4, %p197_p3 }
   0xc   : > { %p985_p7 = scmp.ge.s32.totalorder %s1336_s27, 1  ;;  %p205_p8 = scmp.lt.s32.totalorder %s1336_s27, 3 }
   0xd   : > { %s1564_s12 = scalar_select %p1430_p6, 1, 0 }
   0xe   : > { %p1562_p9 = scmp.eq.s32.totalorder %s1409_s28, 0  ;;  %p1437_p10 = pnand %p985_p7, %p205_p8 }
   0xf   : > { %s1338_s14 = smov [#allocation2]   ;;  %s1339_s17 = smov [#allocation5]  }
  0x10   : > { %s223_s15 = sshll.u32 %s1338_s14, 4  ;;  %p1093_p11 = pneg %p1437_p10  ;;  %s224_s15 = int_to_ptr.vmem [resolvable:$true] %s223_s15 }
  0x11   : > { %s239_s18 = sshll.u32 %s1339_s17, 4  ;;  %s1227_s19 = scalar_lea.vmem %s224_s15, 4096  ;;  %s240_s18 = int_to_ptr.vmem [resolvable:$true] %s239_s18 }
  0x12   : > { %p1445_p12 = pnand %p1562_p9, %p1093_p11  ;;  %p1228_p0 = scmp.ne.s32.totalorder %s224_s15, %s1227_s19 }
  0x13   : > { %p1235_p3 = scmp.lt.s32.totalorder %s224_s15, %s224_s15  ;;  %p1236_p4 = scmp.lt.s32.totalorder %s1227_s19, %s1227_s19 }
  0x14   : > { %p1218_p13 = pneg %p1445_p12 }
  0x15   : > { %p1237_p7 = por %p1236_p4, %p1235_p3 }
  0x16   : > { %p1230_p1 = pnand %p1228_p0, %p1218_p13 }
  0x18   : > { %p1231_p2 = pneg %p1230_p1 }
  0x1a   : > { %p1238_p8 = pnand %p1237_p7, %p1231_p2 }
  0x1c   : > { %1241 = shalt.err (!%p1238_p8)
}
  0x1d   : > { %s1340_s20 = smov 128   ;;  %s1341_s21 = smov 8  }
  0x1e   : > { %1096 = dma.hbm_to_vmem [thread:$0]  (!%p1445_p12), %s1557_s3, 4096, %s224_s15, [#allocation3], %s1340_s20, %s1340_s20, %s1341_s21  }
  0x1f   : > { %s1253_s29 = scalar_lea.vmem %s240_s18, 2048  ;;  %p1261_p9 = scmp.lt.s32.totalorder %s240_s18, %s240_s18 }
  0x20   : > { %p1254_p11 = scmp.ne.s32.totalorder %s240_s18, %s1253_s29  ;;  %p1262_p6 = scmp.lt.s32.totalorder %s1253_s29, %s1253_s29 }
  0x22   : > { %p1256_p0 = pnand %p1254_p11, %p1218_p13  ;;  %p1263_p3 = por %p1262_p6, %p1261_p9 }
  0x24   : > { %p1257_p1 = pneg %p1256_p0 }
  0x26   : > { %p1264_p2 = pnand %p1263_p3, %p1257_p1 }
  0x28   : > { %1267 = shalt.err (!%p1264_p2)
}
  0x29   : > { %s1342_s8 = smov 64   ;;  %s1343_s9 = smov 4  }
  0x2a   : > { %1099 = dma.hbm_to_vmem [thread:$0]  (!%p1445_p12), %s1559_s5, 2048, %s240_s18, [#allocation6], %s1342_s8, %s1342_s8, %s1343_s9  }
  0x2b   : > { %267 = sbr.rel (%p1437_p10) target bundleno = 703 (0x2bf), region = 48  ;;  %p1567_p4 = scmp.eq.s32.totalorder (!%p1437_p10), %s1409_s28, 0 }
  0x30   : > { %1311 = dma.done.wait (%p1567_p4), [#allocation3], 4096   ;;  %p1568_p13 = pmov %p1567_p4 }
  0x31   : > { %p1569_p6 = pmov %p1567_p4 }
  0x32   : > { %1313 = vsyncadd (%p1568_p13), [#allocation3], 4294963200 }
  0x33   : > { %1315 = dma.done.wait (%p1569_p6), [#allocation6], 2048   ;;  %p1570_p9 = pmov %p1567_p4 }
  0x34   : > { %s993_s15 = sshll.u32 %s1409_s28, 2  ;;  %v1344_v0 = vmov 0   ;;  %v317_v1 = vld [vmem:[%s1555_s1] sm:$0xff]  ;;  %vm342_vm0 = vcmask 1043456   ;;  %v1152_v6 = vld [vmem:[#allocation2 + $0x74] ss:$8 sps:$4 sm:$0xff]   ;;  %v320_v53 = vlaneseq }
  0x35   : > { %1317 = vsyncadd (%p1570_p9), [#allocation6], 4294965248  ;;  %381 = vmatprep.mubr.bf16.mxu0 %v1344_v0  ;;  %p304_p12 = scmp.lt.s32.totalorder %s993_s15, 7  ;;  %v996_v4 = vcombine.high %v317_v1, %v317_v1  ;;  %v995_v5 = vcombine.low %v317_v1, %v317_v1  ;;  %v1154_v7 = vld [vmem:[#allocation2 + $0x70] ss:$8 sps:$4 sm:$0xff]   ;;  %vm335_vm1 = vcmask 64512   ;;  %618 = vmatprep.subr.bf16.mxu1 %v1152_v6 }
  0x36   : > { %v1155_v10 = vld [vmem:[#allocation2 + $0x64] ss:$8 sps:$4 sm:$0xff]   ;;  %619 = vmatpush1.bf16.msra.mxu1 %v1154_v7  ;;  %v1157_v11 = vld [vmem:[#allocation2 + $0x60] ss:$8 sps:$4 sm:$0xff]   ;;  %v1158_v12 = vld [vmem:[#allocation2 + $0x54] ss:$8 sps:$4 sm:$0xff]  }
  0x37   : > { %s1577_s15 = smov (!%p304_p12, %s993_s15), 7  ;;  %997 = vmatprep.subr.msk.bf16.mxu0 %vm342_vm0, %v996_v4  ;;  %v344_v8 = vsel %vm342_vm0, %v995_v5, 0  ;;  %620 = vmatprep.subr.bf16.mxu1 %v1155_v10  ;;  %v1160_v15 = vld [vmem:[#allocation2 + $0x50] ss:$8 sps:$4 sm:$0xff]   ;;  %v1161_v16 = vld [vmem:[#allocation2 + $0x44] ss:$8 sps:$4 sm:$0xff]  }
  0x38   : > { %s994_s13 = sshll.u32 %s1577_s15, 3  ;;  %364 = vmatpush1.bf16.msra.mxu0 %v344_v8  ;;  %v1163_v18 = vld [vmem:[#allocation2 + $0x40] ss:$8 sps:$4 sm:$0xff]   ;;  %v1164_v19 = vld [vmem:[#allocation2 + $0x34] ss:$8 sps:$4 sm:$0xff]   ;;  %v321_v54 = vshrl.u32 %v320_v53, 7 }
  0x39   : > { %s307_s19 = scalar_lea.vmem %s1554_s0, %s994_s13  ;;  %v1166_v20 = vld [vmem:[#allocation2 + $0x30] ss:$8 sps:$4 sm:$0xff]   ;;  %v1167_v21 = vld [vmem:[#allocation2 + $0x24] ss:$8 sps:$4 sm:$0xff]   ;;  %v1169_v22 = vld [vmem:[#allocation2 + $0x20] ss:$8 sps:$4 sm:$0xff]  }
  0x3a   : > { %v311_v2 = vld [vmem:[%s307_s19] sm:$0xff]  ;;  %v312_v3 = vld [vmem:[%s307_s19 + $0x8] sm:$0xff]  ;;  %v313_v13 = vld [vmem:[%s307_s19 + $0x10] sm:$0xff]  ;;  %621 = vmatpush1.bf16.msra.mxu1 %v1157_v11  ;;  %v326_v55 = vsub.s32 1, %v321_v54  ;;  %v322_v56 = vsub.s32 0, %v321_v54  ;;  %s300_s17 = sand.u32 1, %s1328_s25  }
  0x3b   : > { %v315_v9 = vpack.c.bf16 %v312_v3, %v311_v2  ;;  %v314_v14 = vld [vmem:[%s307_s19 + $0x18] sm:$0xff]  ;;  %622 = vmatprep.subr.bf16.mxu1 %v1158_v12  ;;  %v1173_v25 = vld [vmem:[#allocation2 + $0x4] ss:$8 sps:$4 sm:$0xff]   ;;  %v1175_v26 = vld [vmem:[#allocation2] ss:$8 sps:$4 sm:$0xff]   ;;  %s992_s15 = sshll.u32 %s300_s17, 5 }
  0x3c   : > { %v316_v17 = vpack.c.bf16 %v314_v14, %v313_v13  ;;  %v1170_v23 = vld [vmem:[#allocation2 + $0x14] ss:$8 sps:$4 sm:$0xff]   ;;  %v1172_v24 = vld [vmem:[#allocation2 + $0x10] ss:$8 sps:$4 sm:$0xff]   ;;  %v1179_v29 = vld [vmem:[#allocation2 + $0xe4] ss:$8 sps:$4 sm:$0xff]  }
  0x3d   : > { %998 = vmatmul.mubr.msk.bf16.vlgmr.msra.gmra.mxu0 %vm335_vm1, %v315_v9  ;;  %v1176_v27 = vld [vmem:[#allocation2 + $0xf4] ss:$8 sps:$4 sm:$0xff]   ;;  %v1178_v28 = vld [vmem:[#allocation2 + $0xf0] ss:$8 sps:$4 sm:$0xff]   ;;  %v1181_v30 = vld [vmem:[#allocation2 + $0xe0] ss:$8 sps:$4 sm:$0xff]  }
  0x3e   : > { %391 = vmatprep.mubr.bf16.mxu0 %v1344_v0  ;;  %623 = vmatpush1.bf16.msra.mxu1 %v1160_v15  ;;  %v1182_v31 = vld [vmem:[#allocation2 + $0xd4] ss:$8 sps:$4 sm:$0xff]   ;;  %v1184_v32 = vld [vmem:[#allocation2 + $0xd0] ss:$8 sps:$4 sm:$0xff]   ;;  %v1185_v33 = vld [vmem:[#allocation2 + $0xc4] ss:$8 sps:$4 sm:$0xff]  }
  0x3f   : > { %624 = vmatprep.subr.bf16.mxu1 %v1161_v16  ;;  %v1187_v34 = vld [vmem:[#allocation2 + $0xc0] ss:$8 sps:$4 sm:$0xff]   ;;  %v1188_v35 = vld [vmem:[#allocation2 + $0xb4] ss:$8 sps:$4 sm:$0xff]   ;;  %v1190_v36 = vld [vmem:[#allocation2 + $0xb0] ss:$8 sps:$4 sm:$0xff]  }
  0x40   : > { %v1191_v37 = vld [vmem:[#allocation2 + $0xa4] ss:$8 sps:$4 sm:$0xff]   ;;  %v1193_v38 = vld [vmem:[#allocation2 + $0xa0] ss:$8 sps:$4 sm:$0xff]   ;;  %v1194_v39 = vld [vmem:[#allocation2 + $0x94] ss:$8 sps:$4 sm:$0xff]  }
  0x41   : > { %v1196_v40 = vld [vmem:[#allocation2 + $0x90] ss:$8 sps:$4 sm:$0xff]   ;;  %v1197_v41 = vld [vmem:[#allocation2 + $0x84] ss:$8 sps:$4 sm:$0xff]   ;;  %v1199_v42 = vld [vmem:[#allocation2 + $0x80] ss:$8 sps:$4 sm:$0xff]  }
  0x42   : > { %625 = vmatpush1.bf16.msra.mxu1 %v1163_v18  ;;  %v1200_v43 = vld [vmem:[#allocation5 + $0x78] sm:$0xff]   ;;  %v1202_v45 = vld [vmem:[#allocation5 + $0x70] sm:$0xff]   ;;  %v1204_v47 = vld [vmem:[#allocation5 + $0x68] sm:$0xff]   ;;  %s302_s13 = scalar_lea.vmem [#allocation7], %s992_s15  ;;  %s1054_s18 = sshll.u32 %s1409_s28, 9 }
  0x43   : > { %626 = vmatprep.subr.bf16.mxu1 %v1164_v19  ;;  %v1201_v44 = vld [vmem:[#allocation5 + $0x38] sm:$0xff]   ;;  %1055 = vmatprep.subr.bf16.mxu0 %v1200_v43  ;;  %v1203_v46 = vld [vmem:[#allocation5 + $0x30] sm:$0xff]   ;;  %v1205_v48 = vld [vmem:[#allocation5 + $0x28] sm:$0xff]   ;;  %s900_s16 = sshll.u32 %s302_s13, 4  ;;  %s1509_s21 = scalar_lea.hbm %s1561_s7, %s1054_s18  ;;  %s1504_s16 = int_to_ptr.vmem [resolvable:$true] %s900_s16 }
  0x44   : > { %1056 = vmatpush3.bf16.msra.mxu0 %v1201_v44  ;;  %v1206_v49 = vld [vmem:[#allocation5 + $0x60] sm:$0xff]   ;;  %v1208_v51 = vld [vmem:[#allocation5 + $0x58] sm:$0xff]   ;;  %s1514_s28 = scalar_lea.sflag [#allocation4], %s300_s17  ;;  %s1268_s22 = scalar_lea.vmem %s1504_s16, 512 }
  0x45   : > { %999 = vmatmul.mubr.msk.bf16.gmra.mxu0 %vm335_vm1, %v316_v17  ;;  %1057 = vmatprep.subr.bf16.mxu0 %v1202_v45  ;;  %v1207_v50 = vld [vmem:[#allocation5 + $0x20] sm:$0xff]   ;;  %v1209_v52 = vld [vmem:[#allocation5 + $0x18] sm:$0xff]   ;;  %p1269_p10 = scmp.ne.s32.totalorder %s1504_s16, %s1268_s22  ;;  %s1345_s23 = smov [#allocation7]  }
  0x46   : > { %627 = vmatpush1.bf16.msra.mxu1 %v1166_v20  ;;  %v318_v57 = vld [vmem:[%s1556_s2] sm:$0x3]  ;;  %s1272_s29 = sshll.u32 %s1345_s23, 4  ;;  %s1273_s29 = int_to_ptr.vmem [resolvable:$false] %s1272_s29 }
  0x47   : > { %628 = vmatprep.subr.bf16.mxu1 %v1167_v21  ;;  %v327_v59 = vrot.slane %v318_v57, %v326_v55  ;;  %v323_v60 = vrot.slane %v318_v57, %v322_v56  ;;  %p1270_p7 = pnand %p1269_p10, %p1426_p5  ;;  %s1274_s8 = scalar_lea.vmem %s1273_s29, 1024 }
  0x48   : > { %1058 = vmatpush3.bf16.msra.mxu0 %v1203_v46  ;;  %p1275_p11 = scmp.lt.s32.totalorder %s1504_s16, %s1273_s29  ;;  %p1276_p0 = scmp.lt.s32.totalorder %s1274_s8, %s1268_s22 }
  0x49   : > { %1059 = vmatprep.subr.bf16.mxu0 %v1204_v47  ;;  %p1271_p8 = pneg %p1270_p7 }
  0x4a   : > { %629 = vmatpush1.bf16.msra.mxu1 %v1169_v22  ;;  %p1277_p1 = por %p1276_p0, %p1275_p11 }
  0x4b   : > { %630 = vmatprep.subr.bf16.mxu1 %v1170_v23 }
  0x4c   : > { %1060 = vmatpush3.bf16.msra.mxu0 %v1205_v48  ;;  %p1278_p3 = pnand %p1277_p1, %p1271_p8 }
  0x4d   : > { %1061 = vmatprep.subr.bf16.mxu0 %v1206_v49 }
  0x4e   : > { %631 = vmatpush1.bf16.msra.mxu1 %v1172_v24  ;;  %v1210_v24 = vld [vmem:[#allocation5 + $0x50] sm:$0xff]  }
  0x4f   : > { %632 = vmatprep.subr.bf16.mxu1 %v1173_v25  ;;  %v1211_v25 = vld [vmem:[#allocation5 + $0x10] sm:$0xff]  }
  0x50   : > { %1062 = vmatpush3.bf16.msra.mxu0 %v1207_v50 }
  0x51   : > { %1063 = vmatprep.subr.bf16.mxu0 %v1208_v51 }
  0x52   : > { %633 = vmatpush1.bf16.msra.mxu1 %v1175_v26  ;;  %v1212_v26 = vld [vmem:[#allocation5 + $0x48] sm:$0xff]  }
  0x53   : > { %634 = vmatprep.subr.bf16.mxu1 %v1176_v27  ;;  %v1213_v27 = vld [vmem:[#allocation5 + $0x8] sm:$0xff]  }
  0x54   : > { %1064 = vmatpush3.bf16.msra.mxu0 %v1209_v52 }
  0x55   : > { %1065 = vmatprep.subr.bf16.mxu0 %v1210_v24 }
  0x56   : > { %635 = vmatpush2.bf16.msra.mxu1 %v1178_v28  ;;  %v1214_v28 = vld [vmem:[#allocation5 + $0x40] sm:$0xff]  }
  0x57   : > { %636 = vmatprep.subr.bf16.mxu1 %v1179_v29  ;;  %v1215_v29 = vld [vmem:[#allocation5] sm:$0xff]  }
  0x58   : > { %1066 = vmatpush3.bf16.msra.mxu0 %v1211_v25 }
  0x59   : > { %1067 = vmatprep.subr.bf16.mxu0 %v1212_v26 }
  0x5a   : > { %637 = vmatpush2.bf16.msra.mxu1 %v1181_v30  ;;  %v446_v30 = vld [vmem:[%s1558_s4] sm:$0x3] }
  0x5b   : > { %638 = vmatprep.subr.bf16.mxu1 %v1182_v31 }
  0x5c   : > { %1068 = vmatpush3.bf16.msra.mxu0 %v1213_v27 }
  0x5d   : > { %1069 = vmatprep.subr.bf16.mxu0 %v1214_v28 }
  0x5e   : > { %639 = vmatpush2.bf16.msra.mxu1 %v1184_v32  ;;  %v455_v32 = vrot.slane %v446_v30, %v326_v55 }
  0x5f   : > { %640 = vmatprep.subr.bf16.mxu1 %v1185_v33  ;;  %v451_v33 = vrot.slane %v446_v30, %v322_v56 }
  0x60   : > { %1070 = vmatpush3.bf16.msra.mxu0 %v1215_v29 }
  0x62   : > { %641 = vmatpush2.bf16.msra.mxu1 %v1187_v34 }
  0x63   : > { %642 = vmatprep.subr.bf16.mxu1 %v1188_v35 }
  0x66   : > { %643 = vmatpush2.bf16.msra.mxu1 %v1190_v36 }
  0x67   : > { %644 = vmatprep.subr.bf16.mxu1 %v1191_v37 }
  0x6a   : > { %645 = vmatpush2.bf16.msra.mxu1 %v1193_v38 }
  0x6b   : > { %646 = vmatprep.subr.bf16.mxu1 %v1194_v39 }
  0x6e   : > { %647 = vmatpush2.bf16.msra.mxu1 %v1196_v40 }
  0x6f   : > { %648 = vmatprep.subr.bf16.mxu1 %v1197_v41 }
  0x72   : > { %649 = vmatpush2.bf16.msra.mxu1 %v1199_v42 }
  0xfd   : > { %v383_v58 = vpop.f32.mrf.mxu0 }
  0xfe   : > { %v384_v1 = vadd.f32 %v383_v58, %v323_v60 }
  0xff   : > { %v385_v61 = vpop.f32.mrf.mxu0 }
 0x100   : > { %v386_v63 = vadd.f32 %v385_v61, %v327_v59  ;;  %v402_v8 = vmax.f32 %v384_v1, 0.0 }
 0x101   : > { %v387_v62 = vpop.f32.mrf.mxu0 }
 0x102   : > { %v388_v0 = vadd.f32 %v387_v62, %v323_v60  ;;  %v403_v6 = vmax.f32 %v386_v63, 0.0  ;;  %v1032_v63 = vld [vmem:[%s1560_s6] ss:$0 sm:$0xff] }
 0x103   : > { %v389_v2 = vpop.f32.mrf.mxu0 }
 0x104   : > { %v390_v3 = vadd.f32 %v389_v2, %v327_v59  ;;  %v404_v4 = vmax.f32 %v388_v0, 0.0  ;;  %v868_v2 = vand.u32 127, %v320_v53 }
 0x105   : > { %v393_v5 = vpop.f32.mrf.mxu0 }
 0x106   : > { %v405_v7 = vmax.f32 %v390_v3, 0.0  ;;  %v410_v11 = vpack.c.bf16 %v404_v4, %v402_v8  ;;  %v394_v15 = vadd.f32 %v393_v5, %v323_v60  ;;  %vm869_vm2 = vcmp.eq.s32.totalorder %v868_v2, 2 }
 0x107   : > { %v395_v9 = vpop.f32.mrf.mxu0 }
 0x108   : > { %v411_v10 = vpack.c.bf16 %v405_v7, %v403_v6  ;;  %v396_v13 = vadd.f32 %v395_v9, %v327_v59  ;;  %v406_v21 = vmax.f32 %v394_v15, 0.0 }
 0x109   : > { %v397_v12 = vpop.f32.mrf.mxu0 }
 0x10a   : > { %v398_v14 = vadd.f32 %v397_v12, %v323_v60  ;;  %650 = vmatprep.mubr.bf16.mxu1 %v411_v10  ;;  %v407_v19 = vmax.f32 %v396_v13, 0.0 }
 0x10b   : > { %v399_v16 = vpop.f32.mrf.mxu0  ;;  %651 = vmatmul.mubr.bf16.vlgmr.msra.gmra.mxu1 %v410_v11 }
 0x10c   : > { %v400_v17 = vadd.f32 %v399_v16, %v327_v59  ;;  %v408_v18 = vmax.f32 %v398_v14, 0.0 }
 0x10e   : > { %v409_v20 = vmax.f32 %v400_v17, 0.0  ;;  %v412_v23 = vpack.c.bf16 %v408_v18, %v406_v21 }
 0x110   : > { %v413_v22 = vpack.c.bf16 %v409_v20, %v407_v19 }
 0x112   : > { %660 = vmatprep.mubr.bf16.mxu1 %v413_v22 }
 0x113   : > { %661 = vmatmul.mubr.bf16.gmra.mxu1 %v412_v23 }
 0x1cb   : > { %v652_v31 = vpop.f32.mrf.mxu1 }
 0x1cc   : > { %v653_v38 = vadd.f32 %v652_v31, %v451_v33 }
 0x1cd   : > { %v654_v34 = vpop.f32.mrf.mxu1 }
 0x1ce   : > { %v655_v36 = vadd.f32 %v654_v34, %v455_v32  ;;  %v671_v45 = vmax.f32 %v653_v38, 0.0 }
 0x1cf   : > { %v656_v35 = vpop.f32.mrf.mxu1 }
 0x1d0   : > { %v657_v37 = vadd.f32 %v656_v35, %v451_v33  ;;  %v672_v43 = vmax.f32 %v655_v36, 0.0 }
 0x1d1   : > { %v658_v39 = vpop.f32.mrf.mxu1 }
 0x1d2   : > { %v659_v40 = vadd.f32 %v658_v39, %v455_v32  ;;  %v673_v41 = vmax.f32 %v657_v37, 0.0 }
 0x1d3   : > { %v662_v42 = vpop.f32.mrf.mxu1 }
 0x1d4   : > { %v674_v44 = vmax.f32 %v659_v40, 0.0  ;;  %v679_v48 = vpack.c.bf16 %v673_v41, %v671_v45  ;;  %v663_v52 = vadd.f32 %v662_v42, %v451_v33 }
 0x1d5   : > { %v664_v46 = vpop.f32.mrf.mxu1 }
 0x1d6   : > { %v680_v47 = vpack.c.bf16 %v674_v44, %v672_v43  ;;  %v665_v50 = vadd.f32 %v664_v46, %v455_v32  ;;  %v675_v59 = vmax.f32 %v663_v52, 0.0 }
 0x1d7   : > { %v666_v49 = vpop.f32.mrf.mxu1 }
 0x1d8   : > { %v667_v51 = vadd.f32 %v666_v49, %v451_v33  ;;  %850 = vmatprep.mubr.bf16.mxu0 %v680_v47  ;;  %v676_v57 = vmax.f32 %v665_v50, 0.0 }
 0x1d9   : > { %v668_v54 = vpop.f32.mrf.mxu1  ;;  %851 = vmatmul.mubr.bf16.vlgmr.msra.gmra.mxu0 %v679_v48 }
 0x1da   : > { %v669_v55 = vadd.f32 %v668_v54, %v455_v32  ;;  %v677_v56 = vmax.f32 %v667_v51, 0.0 }
 0x1dc   : > { %v678_v58 = vmax.f32 %v669_v55, 0.0  ;;  %v681_v61 = vpack.c.bf16 %v677_v56, %v675_v59 }
 0x1de   : > { %v682_v60 = vpack.c.bf16 %v678_v58, %v676_v57 }
 0x1e0   : > { %858 = vmatprep.mubr.bf16.mxu0 %v682_v60 }
 0x1e1   : > { %859 = vmatmul.mubr.bf16.gmra.mxu0 %v681_v61 }
 0x299   : > { %v1071_v62 = vpop.f32.mrf.mxu0 }
 0x29b   : > { %v1072_v0 = vpop.f32.mrf.mxu0 }
 0x29c   : > { %v1073_v1 = vadd.f32 %v1072_v0, %v1071_v62 }
 0x29d   : > { %v1074_v3 = vpop.f32.mrf.mxu0 }
 0x29e   : > { %v853_v4 = vadd.f32 %v1073_v1, %v1032_v63 }
 0x29f   : > { %v1075_v5 = vpop.f32.mrf.mxu0 }
 0x2a0   : > { %v870_v6 = vmax.f32 %v853_v4, 1e-06  ;;  %v1076_v7 = vadd.f32 %v1075_v5, %v1074_v3 }
 0x2a1   : > { %v1077_v8 = vpop.f32.mrf.mxu0 }
 0x2a2   : > { %v874_v9 = vmin.f32 %v870_v6, 1.0  ;;  %v856_v10 = vadd.f32 %v1076_v7, %v1032_v63 }
 0x2a3   : > { %v1078_v11 = vpop.f32.mrf.mxu0 }
 0x2a4   : > { %v878_v12 = vsel %vm869_vm2, %v874_v9, %v853_v4  ;;  %v871_v13 = vmax.f32 %v856_v10, 1e-06  ;;  %v1079_v14 = vadd.f32 %v1078_v11, %v1077_v8 }
 0x2a5   : > { %882 = vst [vmem:[%s302_s13] sm:$0xff] %v878_v12  ;;  %v1080_v53 = vpop.f32.mrf.mxu0 }
 0x2a6   : > { %v875_v15 = vmin.f32 %v871_v13, 1.0  ;;  %v861_v16 = vadd.f32 %v1079_v14, %v1032_v63 }
 0x2a7   : > { %v1081_v17 = vpop.f32.mrf.mxu0 }
 0x2a8   : > { %v879_v18 = vsel %vm869_vm2, %v875_v15, %v856_v10  ;;  %v872_v19 = vmax.f32 %v861_v16, 1e-06  ;;  %v1082_v20 = vadd.f32 %v1081_v17, %v1080_v53 }
 0x2a9   : > { %883 = vst [vmem:[%s302_s13 + $0x8] sm:$0xff] %v879_v18 }
 0x2aa   : > { %v876_v21 = vmin.f32 %v872_v19, 1.0  ;;  %v864_v22 = vadd.f32 %v1082_v20, %v1032_v63 }
 0x2ac   : > { %v880_v23 = vsel %vm869_vm2, %v876_v21, %v861_v16  ;;  %v873_v24 = vmax.f32 %v864_v22, 1e-06 }
 0x2ad   : > { %884 = vst [vmem:[%s302_s13 + $0x10] sm:$0xff] %v880_v23 }
 0x2ae   : > { %v877_v25 = vmin.f32 %v873_v24, 1.0 }
 0x2b0   : > { %v881_v26 = vsel %vm869_vm2, %v877_v25, %v864_v22 }
 0x2b1   : > { %885 = vst [vmem:[%s302_s13 + $0x18] sm:$0xff] %v881_v26 }
 0x2b2   : > { %1281 = shalt.err (!%p1278_p3)
}
 0x2b3   : > { %s1282_s9 = scalar_lea.hbm %s1509_s21, 512  ;;  %s1286_s15 = scalar_lea.hbm %s1561_s7, 1024 }
 0x2b4   : > { %p1283_p2 = scmp.ne.s32.totalorder %s1509_s21, %s1282_s9  ;;  %p1287_p6 = scmp.lt.s32.totalorder %s1509_s21, %s1561_s7 }
 0x2b5   : > { %p1288_p9 = scmp.lt.s32.totalorder %s1286_s15, %s1282_s9 }
 0x2b6   : > { %p1284_p4 = pnand %p1283_p2, %p1426_p5 }
 0x2b7   : > { %p1289_p12 = por %p1288_p9, %p1287_p6 }
 0x2b8   : > { %p1285_p13 = pneg %p1284_p4 }
 0x2ba   : > { %p1290_p10 = pnand %p1289_p12, %p1285_p13 }
 0x2bc   : > { %1293 = shalt.err (!%p1290_p10)
}
 0x2bd   : > { %s1346_s19 = smov 128   ;;  %s1347_s20 = smov 8  }
 0x2be   : > { %1091 = dma.vmem_to_hbm [thread:$0]  (%p1426_p5), %s1504_s16, 512, %s1509_s21, %s1514_s28, %s1346_s19, %s1346_s19, %s1347_s20  }
 0x2bf PF: > { %p1108_p7 = scmp.ge.s32.totalorder %s1336_s27, 2  ;;  %s915_s22 = sand.u32 1, %s1324_s24  }
 0x2c0   : > { %p1571_p8 = scmp.ne.s32.totalorder %s1564_s12, 0  ;;  %s916_s23 = scalar_lea.sflag [#allocation4], %s915_s22 }
 0x2c2   : > { %p1101_p11 = pnand %p1108_p7, %p1571_p8 }
 0x2c4   : > { %p1102_p0 = pneg %p1101_p11 }
 0x2c6   : > { %1319 = dma.done.wait (%p1102_p0), %s916_s23, 512  }
 0x2c7   : > { %1321 = vsyncadd (%p1102_p0), %s916_s23, 4294966784  ;;  %p19_p1 = scmp.ge.s32.totalorder %s1413_s30, 4   ;;  %s1572_s24 = smov %s1328_s25 }
 0x2c8   : > { %s1573_s25 = smov %s1332_s26  ;;  %s1574_s26 = smov %s1424_s10 }
 0x2c9   : > { %s1575_s27 = smov %s1413_s30  ;;  %21 = sbr.rel (!%p19_p1) target bundleno = 5 (0x5), region = 92 }
 0x2ce   :  { %921 = vsyncpa [#allocation3], 1 }
 0x2cf   :  { %923 = vsyncpa [#allocation3 + $0x1], 1 }
 0x2d0   :  { %924 = vsyncpa [#allocation6], 1 }
 0x2d1   :  { %925 = vsyncpa [#allocation4], 1 }
 0x2d2   :  { %927 = vsyncpa [#allocation4 + $0x1], 1 }

</bundles_post_ra>
